<compile_context>
chip_gen: v6e
topology: v6e:2x2x1
jax: 0.10.0
libtpu: 0.0.40
codegen_flags: <defaults>
</compile_context>

<pallas_src>
import functools

import jax
import jax.numpy as jnp
from jax.experimental import pallas as pl
from jax.experimental.pallas import tpu as pltpu

LANES = 128


def _vn_kernel(w_ref, x_ref, o_ref, *, c_out):
    # w_ref: (c_out,) f32 in SMEM            (VNLinear weight, C_in == 1)
    # x_ref: (1, TM, 128) VMEM input tile    (sublane/lane dense)
    # o_ref: (1, c_out, TM, 128) VMEM output tile
    x = x_ref[0]                       # (TM, 128) -- full dense vregs
    for o in range(c_out):             # c_out == 3, static unroll
        o_ref[0, o] = (w_ref[o] * x).astype(o_ref.dtype)


def _pick_row_tile(s, max_tm=512):
    """Largest sublane tile (multiple of 8, <= max_tm) dividing s; else s itself."""
    if s <= max_tm:
        return s
    tm = (max_tm // 8) * 8
    while tm >= 8:
        if s % tm == 0:
            return tm
        tm -= 8
    return s  # falls back to full dim (always legal as a block shape)


def vn_module_forward(x, w, *, max_tm=512):
    """x: [B, 1, 3, N] f32, w: [C_out, 1] f32 -> [B, C_out, 3, N] f32."""
    B, C_in, D, N = x.shape
    C_out, C_in_w = w.shape
    assert C_in == 1 and C_in_w == 1, "VNLinear(1, C_out): C_in must be 1"

    M = D * N
    S = pl.cdiv(M, LANES)
    M_pad = S * LANES

    # Contiguous (free) reshape only -- no transposes.
    x_flat = x.reshape(B, M)
    if M_pad != M:
        # TODO(synk): avoid the extra HBM pass here by using pl.BoundedSlice on
        # the ragged lane tail instead of zero-padding in the wrapper.
        x_flat = jnp.pad(x_flat, ((0, 0), (0, M_pad - M)))
    x_r = x_flat.reshape(B, S, LANES)
    w_flat = w.reshape(C_out)

    TM = _pick_row_tile(S, max_tm)
    assert S % TM == 0

    out_r = pl.pallas_call(
        functools.partial(_vn_kernel, c_out=C_out),
        out_shape=jax.ShapeDtypeStruct((B, C_out, S, LANES), x.dtype),
        grid_spec=pltpu.PrefetchScalarGridSpec(
            num_scalar_prefetch=0,
            grid=(B, S // TM),
            in_specs=[
                # tiny weight vector lives in SMEM for the whole kernel
                pl.BlockSpec(memory_space=pltpu.MemorySpace.SMEM),
                # sublane/lane-dense slab of the input
                pl.BlockSpec((1, TM, LANES), lambda b, j: (b, j, 0)),
            ],
            out_specs=pl.BlockSpec((1, C_out, TM, LANES), lambda b, j: (b, 0, j, 0)),
        ),
        compiler_params=pltpu.CompilerParams(
            dimension_semantics=("parallel", "parallel"),
            vmem_limit_bytes=32 * 1024 * 1024,
        ),
    )(w_flat, x_r)

    # Free contiguous reshape back to the PyTorch [B, C_out, 3, N] layout.
    out_flat = out_r.reshape(B, C_out, M_pad)
    if M_pad != M:
        out_flat = out_flat[:, :, :M]
    return out_flat.reshape(B, C_out, D, N)


def vn_module_reference(x, w):
    # out[b,o,d,n] = sum_c W[o,c] * x[b,c,d,n]
    return jnp.einsum("oc,bcdn->bodn", w, x)


if __name__ == "__main__":
    key = jax.random.PRNGKey(0)
    k_x, k_w = jax.random.split(key)

    B, C_in, D, N = 2, 1, 3, 128      # x: [B, C_in=1, 3, N]
    C_out = 3                         # VNLinear(1, 3)

    x = jax.random.normal(k_x, (B, C_in, D, N), dtype=jnp.float32)
    # deterministic weight init (nn.Linear default is U(-1/sqrt(fan_in), 1/sqrt(fan_in)))
    w = jax.random.uniform(k_w, (C_out, C_in), dtype=jnp.float32, minval=-1.0, maxval=1.0)

    out = vn_module_forward(x, w)
    out = jax.block_until_ready(out)

    ref = vn_module_reference(x, w)
    assert out.shape == (B, C_out, D, N), out.shape
    assert jnp.allclose(out, ref, atol=1e-6, rtol=1e-6), "mismatch vs reference"

    print("KERNEL_OK")
</pallas_src>

<mosaic_0001>
module attributes {stable_mosaic.version = 11 : i64} {
  func.func @_vn_kernel(%arg0: i32, %arg1: i32, %arg2: memref<3xf32, #tpu.memory_space<smem>>, %arg3: memref<1x3x128xf32, #tpu.memory_space<vmem>>, %arg4: memref<1x3x3x128xf32, #tpu.memory_space<vmem>>) attributes {dimension_semantics = [#tpu.dimension_semantics<parallel>, #tpu.dimension_semantics<parallel>], iteration_bounds = array<i64: 2, 1>, scalar_prefetch = 0 : i64, scratch_operands = 0 : i64, tpu.core_type = #tpu.core_type<tc>, window_params = [{transform_indices = @transform_0, window_bounds = array<i64: 3>}, {transform_indices = @transform_1, window_bounds = array<i64: 1, 3, 128>}, {transform_indices = @transform_2, window_bounds = array<i64: 1, 3, 3, 128>}]} {
    %c0 = arith.constant 0 : index
    %c0_0 = arith.constant 0 : index
    %c0_1 = arith.constant 0 : index
    %0 = vector.load %arg3[%c0, %c0_0, %c0_1] : memref<1x3x128xf32, #tpu.memory_space<vmem>>, vector<1x3x128xf32>
    %1 = vector.shape_cast %0 : vector<1x3x128xf32> to vector<3x128xf32>
    %c0_2 = arith.constant 0 : index
    %2 = memref.load %arg2[%c0_2] : memref<3xf32, #tpu.memory_space<smem>>
    %3 = vector.broadcast %2 : f32 to vector<3x128xf32>
    %4 = arith.mulf %3, %1 : vector<3x128xf32>
    %c0_3 = arith.constant 0 : index
    %c0_4 = arith.constant 0 : index
    %c0_5 = arith.constant 0 : index
    %c0_6 = arith.constant 0 : index
    %5 = vector.load %arg4[%c0_3, %c0_4, %c0_5, %c0_6] : memref<1x3x3x128xf32, #tpu.memory_space<vmem>>, vector<1x1x3x128xf32>
    %6 = vector.shape_cast %5 : vector<1x1x3x128xf32> to vector<3x128xf32>
    %7 = vector.shape_cast %4 : vector<3x128xf32> to vector<1x1x3x128xf32>
    tpu.vector_store %arg4[%c0_3, %c0_4, %c0_5, %c0_6], %7 {strides = array<i32>} : memref<1x3x3x128xf32, #tpu.memory_space<vmem>>, vector<1x1x3x128xf32>,
    %c1 = arith.constant 1 : index
    %8 = memref.load %arg2[%c1] : memref<3xf32, #tpu.memory_space<smem>>
    %9 = vector.broadcast %8 : f32 to vector<3x128xf32>
    %10 = arith.mulf %9, %1 : vector<3x128xf32>
    %c0_7 = arith.constant 0 : index
    %c1_8 = arith.constant 1 : index
    %c0_9 = arith.constant 0 : index
    %c0_10 = arith.constant 0 : index
    %11 = vector.load %arg4[%c0_7, %c1_8, %c0_9, %c0_10] : memref<1x3x3x128xf32, #tpu.memory_space<vmem>>, vector<1x1x3x128xf32>
    %12 = vector.shape_cast %11 : vector<1x1x3x128xf32> to vector<3x128xf32>
    %13 = vector.shape_cast %10 : vector<3x128xf32> to vector<1x1x3x128xf32>
    tpu.vector_store %arg4[%c0_7, %c1_8, %c0_9, %c0_10], %13 {strides = array<i32>} : memref<1x3x3x128xf32, #tpu.memory_space<vmem>>, vector<1x1x3x128xf32>,
    %c2 = arith.constant 2 : index
    %14 = memref.load %arg2[%c2] : memref<3xf32, #tpu.memory_space<smem>>
    %15 = vector.broadcast %14 : f32 to vector<3x128xf32>
    %16 = arith.mulf %15, %1 : vector<3x128xf32>
    %c0_11 = arith.constant 0 : index
    %c2_12 = arith.constant 2 : index
    %c0_13 = arith.constant 0 : index
    %c0_14 = arith.constant 0 : index
    %17 = vector.load %arg4[%c0_11, %c2_12, %c0_13, %c0_14] : memref<1x3x3x128xf32, #tpu.memory_space<vmem>>, vector<1x1x3x128xf32>
    %18 = vector.shape_cast %17 : vector<1x1x3x128xf32> to vector<3x128xf32>
    %19 = vector.shape_cast %16 : vector<3x128xf32> to vector<1x1x3x128xf32>
    tpu.vector_store %arg4[%c0_11, %c2_12, %c0_13, %c0_14], %19 {strides = array<i32>} : memref<1x3x3x128xf32, #tpu.memory_space<vmem>>, vector<1x1x3x128xf32>,
    return
  }
  func.func @transform_0(%arg0: i32, %arg1: i32) -> i32 {
    %c0_i32 = arith.constant 0 : i32
    %c0_i32_0 = arith.constant 0 : i32
    return %c0_i32 : i32
  }
  func.func @transform_1(%arg0: i32, %arg1: i32) -> (i32, i32, i32) {
    %c0_i32 = arith.constant 0 : i32
    %c0_i32_0 = arith.constant 0 : i32
    return %arg0, %arg1, %c0_i32 : i32, i32, i32
  }
  func.func @transform_2(%arg0: i32, %arg1: i32) -> (i32, i32, i32, i32) {
    %c0_i32 = arith.constant 0 : i32
    %c0_i32_0 = arith.constant 0 : i32
    %c0_i32_1 = arith.constant 0 : i32
    return %arg0, %c0_i32, %arg1, %c0_i32_0 : i32, i32, i32, i32
  }
}

</mosaic_0001>

<bundles_post_ra>
// kernel: tpu_custom_call.1
= control target key start
LH: loop header
LB: loop body
LE: loop exit
PB: predicated region body
PF: predicated region fallthrough
CT: control target
= control target key end

     0   :  { %7 = vsyncpa [#allocation3], 0  ;;  %s404_s9 = smov 0   ;;  %s406_s10 = smov 0   ;;  %s463_s0 = inlined_call_operand.vmem [shape: f32[3], index: 0, kind: input, shape index: {}]   ;;  %s464_s1 = inlined_call_operand.vmem [shape: f32[2,3,128], index: 1, kind: input, shape index: {}]   ;;  %s465_s2 = inlined_call_operand.vmem [shape: f32[2,3,3,128], index: 2, kind: output, shape index: {}]  }
   0x1   :  { %s408_s11 = smov 0  }
   0x2 LB: > { %s294_s12 = sadd.s32 4294967295, %s386_s11   ;;  %s25_s13 = sadd.s32 1, %s382_s10  ;;  %s386_s11 = sphi %s408_s11, %s13_s11   ;;  %s382_s10 = sphi %s406_s10, %s469_s10   ;;  %s378_s9 = sphi %s404_s9, %s468_s9  }
   0x3   : > { %p27_p0 = scmp.ge.s32.totalorder %s25_s13, 2  ;;  %p296_p1 = scmp.ge.s32.totalorder %s386_s11, 1 }
   0x4   : > { %p107_p2 = scmp.lt.s32.totalorder %s386_s11, 3  ;;  %p429_p4 = scmp.eq.s32.totalorder %s294_s12, 0 }
   0x5   : > { %s471_s13 = smov (%p27_p0, %s25_s13), 0  ;;  %s120_s18 = sshll.u32 %s463_s0, 4  ;;  %s121_s18 = int_to_ptr.vmem [resolvable:$true] %s120_s18 }
   0x6   : > { %p425_p3 = pnand %p296_p1, %p107_p2  ;;  %s345_s19 = scalar_lea.vmem %s121_s18, 16 }
   0x7   : > { %p346_p7 = scmp.ne.s32.totalorder %s121_s18, %s345_s19  ;;  %p353_p11 = scmp.lt.s32.totalorder %s121_s18, %s121_s18 }
   0x8   : > { %p314_p5 = pneg %p425_p3  ;;  %p354_p12 = scmp.lt.s32.totalorder %s345_s19, %s345_s19 }
   0xa   : > { %p315_p6 = pnand %p429_p4, %p314_p5  ;;  %p355_p13 = por %p354_p12, %p353_p11 }
   0xc   : > { %p347_p8 = pneg %p315_p6 }
   0xe   : > { %p348_p9 = pnand %p347_p8, %p346_p7 }
  0x10   : > { %p349_p10 = pneg %p348_p9 }
  0x12   : > { %p356_p0 = pnand %p355_p13, %p349_p10 }
  0x14   : > { %359 = shalt.err (!%p356_p0)
}
  0x15   : > { %s388_s20 = smov [#allocation2]   ;;  %143 = sbr.rel (%p425_p3) target bundleno = 41 (0x29), region = 28 }
  0x16   : > { %317 = dma.vmem_to_smem (!%p315_p6), %s121_s18, 16, %s388_s20, [#allocation3]  }
  0x1a   : > { %373 = dma.done.wait (%p429_p4), [#allocation3], 16  }
  0x1b   : > { %375 = vsyncadd (%p429_p4), [#allocation3], 4294967280 }
  0x1c   : > { %149 = sfence }
  0x1d   : > { %p171_p1 = scmp.lt.s32.totalorder %s378_s9, 1  ;;  %s187_s21 = sld [smem:[#allocation2]] }
  0x1e   : > { %s303_s22 = sld [smem:[#allocation2 + $0x1]] }
  0x1f   : > { %s473_s9 = smov (!%p171_p1, %s378_s9), 1  ;;  %s305_s23 = sld [smem:[#allocation2 + $0x2]] }
  0x20   : > { %s301_s24 = sshll.u32 %s473_s9, 2  ;;  %s309_s25 = smul.u32 12, %s473_s9 }
  0x21   : > { %s177_s28 = scalar_lea.vmem %s464_s1, %s301_s24 }
  0x22   : > { %s185_s3 = scalar_lea.vmem %s465_s2, %s309_s25  ;;  %v186_v0 = vld [vmem:[%s177_s28] sm:$0x7] }
  0x23   : > { %v188_v1 = vstv %s187_s21 }
  0x24   : > { %v189_v2 = vmul.f32 %v188_v1, %v186_v0  ;;  %v192_v3 = vstv %s303_s22 }
  0x25   : > { %v193_v4 = vmul.f32 %v192_v3, %v186_v0  ;;  %v197_v5 = vstv %s305_s23 }
  0x26   : > { %190 = vst [vmem:[%s185_s3] sm:$0x7] %v189_v2  ;;  %v198_v6 = vmul.f32 %v197_v5, %v186_v0 }
  0x27   : > { %304 = vst [vmem:[%s185_s3 + $0x4] sm:$0x7] %v193_v4 }
  0x28   : > { %306 = vst [vmem:[%s185_s3 + $0x8] sm:$0x7] %v198_v6 }
  0x29 PF: > { %s13_s11 = sadd.s32 1, %s386_s11   ;;  %s468_s9 = smov %s382_s10 }
  0x2a   : > { %p10_p2 = scmp.ge.s32.totalorder %s13_s11, 4   ;;  %s469_s10 = smov %s471_s13 }
  0x2c   :  { %12 = sbr.rel (!%p10_p2) target bundleno = 2 (0x2), region = 65 }
  0x31   :  { %228 = vsyncpa [#allocation3], 1 }
  0x32   :  { %230 = vsyncpa [#allocation3 + $0x1], 1 }

</bundles_post_ra>
